<compile_context>
chip_gen: v5e
topology: v5e:2x2
jax: 0.10.0
libtpu: 0.0.40
codegen_flags: <defaults>
</compile_context>

<pallas_src>
import functools
import math

import jax
import jax.numpy as jnp
from jax.experimental import pallas as pl
from jax.experimental.pallas import tpu as pltpu

# --- small, TPU-friendly stand-ins for the original Config sizes ---
CNN_FEAT = 64        # stand-in for efficientnet_b2 num_features (1408)
BERT_HIDDEN = 32     # stand-in for bert hidden_size (768)
LINEAR_OUT = 128     # stand-in for config.linear_out (1024)
NUM_CLASSES = 1024   # stand-in for num_classes (11014)
ARC_S = 30.0
ARC_M = 0.5
TILE_C = 512         # class-axis tile (bigger tiles amortize per-step overhead / long DMAs)
EPS = 1e-12          # F.normalize eps
SUBLANE = 8          # pad batch to a sublane multiple


def feat_kernel(x_ref, fcw_ref, fcb_ref, featn_ref):
    """fc -> dropout(identity, eval) -> ReLU -> F.normalize, emitted as bf16."""
    feat = jnp.dot(x_ref[...], fcw_ref[...], preferred_element_type=jnp.float32)
    feat = feat + fcb_ref[...]
    # TODO(synk): nn.Dropout is identity here (eval-mode forward); training-mode mask omitted.
    feat = jnp.maximum(feat, 0.0)                                         # ReLU
    sumsq = jnp.sum(feat * feat, axis=-1, keepdims=True)
    inv = jax.lax.rsqrt(jnp.maximum(sumsq, EPS * EPS))                    # == 1/max(||f||, EPS)
    featn_ref[...] = (feat * inv).astype(featn_ref.dtype)                 # F.normalize(input)


def arc_kernel(featn_ref, arcw_ref, label_ref, o_ref, *, cos_m, sin_m, th, mm, s, tile_c):
    """ArcMarginProduct for one tile of classes.  No cross-grid-step state."""
    j = pl.program_id(0)

    w = arcw_ref[...]                                                     # (L, tile_c) bf16
    w32 = w.astype(jnp.float32)
    # F.normalize(weight) applied as a post-matmul column scale: rsqrt of column sum-squares
    # (1 x tile_c) instead of dividing the whole (L x tile_c) tile.
    colnorm = jax.lax.rsqrt(
        jnp.maximum(jnp.sum(w32 * w32, axis=0, keepdims=True), EPS * EPS))

    cosine = jnp.dot(featn_ref[...], w, preferred_element_type=jnp.float32) * colnorm
    sine = jnp.sqrt(jnp.clip(1.0 - cosine * cosine, 0.0, 1.0))
    phi = cosine * cos_m - sine * sin_m
    phi = jnp.where(cosine > th, phi, cosine - mm)                        # easy_margin=False path
    cls_idx = jax.lax.broadcasted_iota(jnp.int32, cosine.shape, 1) + j * tile_c
    one_hot = (cls_idx == label_ref[...]).astype(jnp.float32)             # scatter_ equivalent
    o_ref[...] = (one_hot * phi + (1.0 - one_hot) * cosine) * s


def shopee_head(x, fc_w, fc_b, arc_w, label):
    """x: (B, Fin) f32, fc_w: (Fin, LINEAR_OUT) f32, fc_b: (1, LINEAR_OUT) f32,
    arc_w: (LINEAR_OUT, C) bf16 (W^T), label: (B,) int32 -> (B, C) f32."""
    B, Fin = x.shape
    L, C = arc_w.shape
    tile_c = min(TILE_C, C)
    assert C % tile_c == 0

    # Pad batch to a sublane multiple so MXU rows / output stores are fully occupied.
    Bp = max(SUBLANE, ((B + SUBLANE - 1) // SUBLANE) * SUBLANE)
    x_pad = jnp.pad(x, ((0, Bp - B), (0, 0)))
    label_pad = jnp.pad(label.astype(jnp.int32), (0, Bp - B),
                        constant_values=-1).reshape(Bp, 1)                # -1 never matches

    # ---- stage 1: fc + ReLU + normalize (single shot; everything fits in VMEM) ----
    featn = pl.pallas_call(
        feat_kernel,
        out_shape=jax.ShapeDtypeStruct((Bp, L), jnp.bfloat16),
    )(x_pad, fc_w, fc_b)

    # ---- stage 2: arc-margin over class tiles ----
    kernel = functools.partial(
        arc_kernel,
        cos_m=math.cos(ARC_M),
        sin_m=math.sin(ARC_M),
        th=math.cos(math.pi - ARC_M),
        mm=math.sin(math.pi - ARC_M) * ARC_M,
        s=ARC_S,
        tile_c=tile_c,
    )
    out = pl.pallas_call(
        kernel,
        out_shape=jax.ShapeDtypeStruct((Bp, C), jnp.float32),
        grid_spec=pltpu.PrefetchScalarGridSpec(
            num_scalar_prefetch=0,
            grid=(C // tile_c,),
            in_specs=[
                pl.BlockSpec((Bp, L), lambda j: (0, 0)),        # normalized features (bf16)
                pl.BlockSpec((L, tile_c), lambda j: (0, j)),    # arc weight tile (W^T, bf16)
                pl.BlockSpec((Bp, 1), lambda j: (0, 0)),        # labels (same block every step)
            ],
            out_specs=pl.BlockSpec((Bp, tile_c), lambda j: (0, j)),
        ),
        # No cross-step state -> class axis can be sharded across TensorCores (v7x megacore).
        # NOTE: at production sizes (LINEAR_OUT=1024, C=11014, TILE_C=512, bf16) each arc_w
        # tile is ~1 MiB x 2 buffers -- well inside the 32 MiB scoped-VMEM default on v7x;
        # re-derive the budget (vmem_limit_bytes) before raising TILE_C to 1024 there.
        compiler_params=pltpu.CompilerParams(dimension_semantics=("parallel",)),
    )(featn, arc_w, label_pad)
    return out[:B]


if __name__ == "__main__":
    key = jax.random.PRNGKey(0)
    (kimg, kids, klab, kcnn, kemb, kpool, kfcw, karc) = jax.random.split(key, 8)

    B, Cimg, H, W = 2, 3, 16, 16
    SEQ, VOCAB = 8, 100

    # Inputs matching ShopeeNet.forward signature (small shapes).
    X_image = jax.random.normal(kimg, (B, Cimg, H, W), jnp.float32)        # NCHW
    input_ids = jax.random.randint(kids, (B, SEQ), 0, VOCAB)
    attention_mask = jnp.ones((B, SEQ), jnp.float32)
    label = jax.random.randint(klab, (B,), 0, NUM_CLASSES)

    # TODO(synk): efficientnet_b2 backbone has no Pallas equivalent; replaced with a
    # deterministic global-average-pool + linear stub producing CNN_FEAT features.
    cnn_proj = jax.random.normal(kcnn, (Cimg, CNN_FEAT), jnp.float32) * 0.1
    img_feat = jnp.mean(X_image, axis=(2, 3)) @ cnn_proj                   # (B, CNN_FEAT)

    # TODO(synk): bert-base-uncased pooled output has no Pallas equivalent; replaced with a
    # deterministic embedding + masked-mean-pool + tanh-linear stub of size BERT_HIDDEN.
    emb_table = jax.random.normal(kemb, (VOCAB, BERT_HIDDEN), jnp.float32) * 0.1
    pooler_w = jax.random.normal(kpool, (BERT_HIDDEN, BERT_HIDDEN), jnp.float32) * 0.1
    emb = emb_table[input_ids]                                             # (B, SEQ, BERT_HIDDEN)
    mask = attention_mask[..., None]
    pooled = jnp.sum(emb * mask, axis=1) / jnp.maximum(jnp.sum(mask, axis=1), 1.0)
    txt_feat = jnp.tanh(pooled @ pooler_w)                                 # (B, BERT_HIDDEN)

    # torch.cat([x, text], dim=1)
    x = jnp.concatenate([img_feat, txt_feat], axis=1)                      # (B, Fin)
    Fin = CNN_FEAT + BERT_HIDDEN

    # Deterministic parameter init (xavier-uniform-style ranges).
    fc_w = (jax.random.uniform(kfcw, (Fin, LINEAR_OUT), jnp.float32) - 0.5) \
        * 2.0 * math.sqrt(6.0 / (Fin + LINEAR_OUT))
    fc_b = jnp.zeros((1, LINEAR_OUT), jnp.float32)
    arc_w = (jax.random.uniform(karc, (LINEAR_OUT, NUM_CLASSES), jnp.float32) - 0.5) \
        * 2.0 * math.sqrt(6.0 / (LINEAR_OUT + NUM_CLASSES))
    # Stream the arc-margin weight in bf16 (HBM-bound input); margin math stays f32 in-kernel.
    arc_w_bf16 = arc_w.astype(jnp.bfloat16)

    out = shopee_head(x, fc_w, fc_b, arc_w_bf16, label)
    out = jax.block_until_ready(out)

    # Plain-JAX reference of the same head (mirroring the bf16 casts of the cosine matmul).
    feat = jnp.maximum(jnp.dot(x, fc_w, preferred_element_type=jnp.float32) + fc_b, 0.0)
    fn = feat * jax.lax.rsqrt(
        jnp.maximum(jnp.sum(feat * feat, axis=1, keepdims=True), EPS * EPS))
    w32 = arc_w_bf16.astype(jnp.float32)
    colnorm = jax.lax.rsqrt(
        jnp.maximum(jnp.sum(w32 * w32, axis=0, keepdims=True), EPS * EPS))
    cos = jnp.dot(fn.astype(jnp.bfloat16), arc_w_bf16,
                  preferred_element_type=jnp.float32) * colnorm
    sin = jnp.sqrt(jnp.clip(1.0 - cos * cos, 0.0, 1.0))
    phi = cos * math.cos(ARC_M) - sin * math.sin(ARC_M)
    phi = jnp.where(cos > math.cos(math.pi - ARC_M), phi,
                    cos - math.sin(math.pi - ARC_M) * ARC_M)
    oh = jax.nn.one_hot(label, NUM_CLASSES, dtype=jnp.float32)
    ref = (oh * phi + (1.0 - oh) * cos) * ARC_S

    assert out.shape == (B, NUM_CLASSES)
    assert jnp.allclose(out, ref, atol=5e-3), "Pallas kernel does not match reference"

    print("KERNEL_OK")
</pallas_src>

<mosaic_0001>
module attributes {stable_mosaic.version = 11 : i64} {
  func.func @feat_kernel(%arg0: memref<8x96xf32, #tpu.memory_space<vmem>>, %arg1: memref<96x128xf32, #tpu.memory_space<vmem>>, %arg2: memref<1x128xf32, #tpu.memory_space<vmem>>, %arg3: memref<8x128xbf16, #tpu.memory_space<vmem>>) attributes {dimension_semantics = [], scalar_prefetch = 0 : i64, scratch_operands = 0 : i64, tpu.core_type = #tpu.core_type<tc>} {
    %c0 = arith.constant 0 : index
    %c0_0 = arith.constant 0 : index
    %0 = vector.load %arg0[%c0, %c0_0] : memref<8x96xf32, #tpu.memory_space<vmem>>, vector<8x96xf32>
    %c0_1 = arith.constant 0 : index
    %c0_2 = arith.constant 0 : index
    %1 = vector.load %arg1[%c0_1, %c0_2] : memref<96x128xf32, #tpu.memory_space<vmem>>, vector<96x128xf32>
    %cst = arith.constant dense<0.000000e+00> : vector<8x128xf32>
    %2 = tpu.matmul %0, %1, %cst {dimension_numbers = #tpu.dot_dimension_numbers<[1], [0], [0], [1], [0, 0, 1, 1], [], []>} : vector<8x96xf32>, vector<96x128xf32>, vector<8x128xf32> -> vector<8x128xf32>
    %c0_3 = arith.constant 0 : index
    %c0_4 = arith.constant 0 : index
    %3 = vector.load %arg2[%c0_3, %c0_4] : memref<1x128xf32, #tpu.memory_space<vmem>>, vector<1x128xf32>
    %4 = vector.broadcast %3 : vector<1x128xf32> to vector<8x128xf32>
    %5 = arith.addf %2, %4 : vector<8x128xf32>
    %cst_5 = arith.constant 0.000000e+00 : f32
    %6 = vector.broadcast %cst_5 : f32 to vector<8x128xf32>
    %7 = arith.maximumf %5, %6 : vector<8x128xf32>
    %8 = arith.mulf %7, %7 : vector<8x128xf32>
    %cst_6 = arith.constant dense<0.000000e+00> : vector<8xf32>
    %9 = vector.multi_reduction <add>, %8, %cst_6 [1] : vector<8x128xf32> to vector<8xf32>
    %10 = vector.shape_cast %9 : vector<8xf32> to vector<8x1xf32>
    %cst_7 = arith.constant 1.000000e-24 : f32
    %11 = vector.broadcast %cst_7 : f32 to vector<8x1xf32>
    %12 = arith.maximumf %10, %11 : vector<8x1xf32>
    %13 = math.rsqrt %12 : vector<8x1xf32>
    %14 = vector.broadcast %13 : vector<8x1xf32> to vector<8x128xf32>
    %15 = arith.mulf %7, %14 : vector<8x128xf32>
    %16 = arith.truncf %15 : vector<8x128xf32> to vector<8x128xbf16>
    %c0_8 = arith.constant 0 : index
    %c0_9 = arith.constant 0 : index
    %17 = vector.load %arg3[%c0_8, %c0_9] : memref<8x128xbf16, #tpu.memory_space<vmem>>, vector<8x128xbf16>
    tpu.vector_store %arg3[%c0_8, %c0_9], %16 {strides = array<i32>} : memref<8x128xbf16, #tpu.memory_space<vmem>>, vector<8x128xbf16>,
    return
  }
}

</mosaic_0001>

<bundles_post_ra>
// kernel: tpu_custom_call.1
= control target key start
LH: loop header
LB: loop body
LE: loop exit
PB: predicated region body
PF: predicated region fallthrough
CT: control target
= control target key end

     0   :  { %8 = vsyncpa [#allocation3], 0  ;;  %s246_s0 = inlined_call_operand.hbm [shape: f32[8,96], index: 0, kind: input, shape index: {}]   ;;  %s247_s1 = inlined_call_operand.hbm [shape: f32[96,128], index: 1, kind: input, shape index: {}]   ;;  %s248_s2 = inlined_call_operand.vmem [shape: f32[1,128], index: 2, kind: input, shape index: {}]   ;;  %s249_s3 = inlined_call_operand.hbm [shape: bf16[8,128], index: 3, kind: output, shape index: {}]  }
   0x1   :  { %9 = vsyncpa [#allocation6], 0 }
   0x2   :  { %10 = vsyncpa [#allocation4], 0  ;;  %s16_s14 = sshll.u32 %s246_s0, 4  ;;  %s209_s15 = smov [#allocation2]   ;;  %s17_s14 = int_to_ptr.hbm [resolvable:$true] %s16_s14 }
   0x3   :  { %s18_s16 = sshll.u32 %s209_s15, 4  ;;  %s26_s19 = sshll.u32 %s247_s1, 4  ;;  %s19_s16 = int_to_ptr.vmem [resolvable:$true] %s18_s16  ;;  %s27_s19 = int_to_ptr.hbm [resolvable:$true] %s26_s19 }
   0x4   :  { %21 = dma.hbm_to_vmem [thread:$0]  %s17_s14, 128, %s19_s16, [#allocation3]  }
   0x5   :  { %s210_s20 = smov [#allocation5]   ;;  %s211_s22 = smov 128  }
   0x6   :  { %s28_s21 = sshll.u32 %s210_s20, 4  ;;  %s212_s23 = smov 8   ;;  %s29_s21 = int_to_ptr.vmem [resolvable:$true] %s28_s21 }
   0x7   :  { %34 = dma.hbm_to_vmem [thread:$0]  %s27_s19, 1536, %s29_s21, [#allocation6], %s211_s22, %s211_s22, %s212_s23  }
   0x8   :  { %203 = dma.done.wait [#allocation3], 128  }
   0x9   :  { %204 = vsyncadd [#allocation3], 4294967168 }
   0xa   :  { %205 = dma.done.wait [#allocation6], 1536  }
   0xb   :  { %206 = vsyncadd [#allocation6], 4294965760  ;;  %v57_v0 = vld [vmem:[#allocation5 + $0x58] sm:$0xff]  ;;  %v56_v1 = vld [vmem:[#allocation5 + $0x50] sm:$0xff]  ;;  %vm62_vm0 = vcmask 785408   ;;  %s213_s24 = smov [#allocation7]  }
   0xc   :  { %70 = vmatpush.msra.mxu0 %v57_v0  ;;  %v55_v2 = vld [vmem:[#allocation5 + $0x48] sm:$0xff]  ;;  %v54_v3 = vld [vmem:[#allocation5 + $0x40] sm:$0xff]  ;;  %v53_v4 = vld [vmem:[#allocation5 + $0x38] sm:$0xff]  ;;  %s111_s27 = sshll.u32 %s249_s3, 4  ;;  %s112_s27 = int_to_ptr.hbm [resolvable:$true] %s111_s27 }
   0xd   :  { %v52_v5 = vld [vmem:[#allocation5 + $0x30] sm:$0xff]  ;;  %v51_v6 = vld [vmem:[#allocation5 + $0x28] sm:$0xff]  ;;  %v50_v7 = vld [vmem:[#allocation5 + $0x20] sm:$0xff] }
   0xe   :  { %71 = vmatpush.msra.mxu0 %v56_v1  ;;  %v49_v8 = vld [vmem:[#allocation5 + $0x18] sm:$0xff]  ;;  %v48_v9 = vld [vmem:[#allocation5 + $0x10] sm:$0xff]  ;;  %v47_v10 = vld [vmem:[#allocation5 + $0x8] sm:$0xff] }
   0xf   :  { %v46_v11 = vld [vmem:[#allocation5] sm:$0xff]  ;;  %v45_v12 = vld [vmem:[#allocation2] sm:$0xff] }
  0x10   :  { %72 = vmatpush.msra.mxu0 %v55_v2  ;;  %v128_v13 = vld [vmem:[%s248_s2] ss:$0 sm:$0xff]  ;;  %s109_s2 = sshll.u32 %s213_s24, 4  ;;  %s110_s2 = int_to_ptr.vmem [resolvable:$true] %s109_s2 }
  0x12   :  { %73 = vmatpush.msra.mxu0 %v54_v3 }
  0x14   :  { %74 = vmatpush.msra.mxu0 %v53_v4 }
  0x16   :  { %75 = vmatpush.msra.mxu0 %v52_v5 }
  0x18   :  { %76 = vmatpush.msra.mxu0 %v51_v6 }
  0x1a   :  { %77 = vmatpush.msra.mxu0 %v50_v7 }
  0x1c   :  { %78 = vmatpush.msra.mxu0 %v49_v8 }
  0x1e   :  { %79 = vmatpush.msra.mxu0 %v48_v9 }
  0x20   :  { %80 = vmatpush.msra.mxu0 %v47_v10 }
  0x22   :  { %81 = vmatpush.msra.mxu0 %v46_v11 }
  0x23   :  { %122 = vmatmul.msk.f32.vlgmr.msra.gmra.mxu0 %vm62_vm0, %v45_v12 }
  0xa0   :  { %v83_v14 = vpop.f32.mrf.mxu0 }
  0xa1   :  { %v84_v15 = vadd.f32 %v128_v13, %v83_v14 }
  0xa3   :  { %v86_v16 = vmax.f32 %v84_v15, 0.0 }
  0xa5   :  { %v87_v17 = vmul.f32 %v86_v16, %v86_v16 }
  0xa7   :  { %88 = vadd.xlane.f32.xlu0 %v87_v17 }
 0x11a   :  { %v89_v18 = vpop.xlane.xlu0 %88 }
 0x11b   :  { %v90_v19 = vmax.f32 %v89_v18, 1e-24 }
 0x11d   :  { %129 = vrsqrt.f32 %v90_v19  ;;  %vm97_vm2 = vweird.f32 %v90_v19 }
 0x123   :  { %v130_v20 = vpop.eup %129 }
 0x124   :  { %v92_v21 = vmul.f32 %v130_v20, %v90_v19  ;;  %vm98_vm1 = vweird.f32 %v130_v20 }
 0x125   :  { %vm99_vm3 = vmor %vm97_vm2, %vm98_vm1 }
 0x126   :  { %v93_v22 = vmul.f32 %v130_v20, %v92_v21 }
 0x128   :  { %v94_v23 = vmul.f32 0.5, %v93_v22 }
 0x12a   :  { %v95_v24 = vsub.f32 1.5, %v94_v23 }
 0x12c   :  { %v96_v25 = vmul.f32 %v130_v20, %v95_v24 }
 0x12e   :  { %v100_v26 = vsel %vm99_vm3, %v130_v20, %v96_v25 }
 0x12f   :  { %v101_v27 = vmul.f32 %v100_v26, %v86_v16 }
 0x131   :  { %v102_v28 = vpack.c.bf16 %v101_v27, %v101_v27 }
 0x133   :  { %103 = vst [vmem:[#allocation7] sm:$0xf] %v102_v28 }
 0x134   :  { %114 = dma.vmem_to_hbm [thread:$0]  %s110_s2, 64, %s112_s27, [#allocation4]  }
 0x135   :  { %207 = dma.done.wait [#allocation4], 64  }
 0x136   :  { %208 = vsyncadd [#allocation4], 4294967232 }
 0x137   :  { %119 = vsyncpa [#allocation3], 1 }
 0x138   :  { %120 = vsyncpa [#allocation6], 1 }
 0x139   :  { %121 = vsyncpa [#allocation4], 1 }

</bundles_post_ra>
